<compile_context>
chip_gen: v7x
topology: tpu7x:2x2x1
jax: 0.10.0
libtpu: 0.0.40
codegen_flags: <defaults>
</compile_context>

<pallas_src>
import jax
import jax.numpy as jnp
from jax.experimental import pallas as pl
from jax.experimental.pallas import tpu as pltpu

_OUT_PAD = 8          # lane padding of the final (32,3) layer -> (32,8)
_TILE_B_MAX = 8192    # batch tile; live set ~12 MiB at this size (see header)
_VMEM_LIMIT = 32 * 1024 * 1024


def _round_up(n, m):
    return ((n + m - 1) // m) * m


def _mlp_kernel(x_ref,
                w1_ref, b1_ref,
                w2_ref, b2_ref,
                w3_ref, b3_ref,
                w4_ref, b4_ref,
                o_ref):
    """Fused 4-layer MLP on one batch tile. bf16 matmul operands, f32 accum."""
    # x arrives as f32 from HBM; cast to bf16 on the VPU (free under the DMA
    # bound) instead of materializing a bf16 copy of x in HBM wrapper-side.
    x = x_ref[...].astype(jnp.bfloat16)              # (TILE_B, D_in)

    h1 = jnp.dot(x, w1_ref[...],
                 preferred_element_type=jnp.float32) + b1_ref[...]
    h1 = jnp.maximum(h1, 0.0)                        # ReLU (f32); dropout = identity (eval)

    h2 = jnp.dot(h1.astype(jnp.bfloat16), w2_ref[...],
                 preferred_element_type=jnp.float32) + b2_ref[...]
    h2 = jnp.maximum(h2, 0.0)                        # ReLU (f32); dropout = identity (eval)

    h3 = jnp.dot(h2.astype(jnp.bfloat16), w3_ref[...],
                 preferred_element_type=jnp.float32) + b3_ref[...]
    h3 = jnp.maximum(h3, 0.0)                        # ReLU (f32)

    o_ref[...] = (jnp.dot(h3.astype(jnp.bfloat16), w4_ref[...],
                          preferred_element_type=jnp.float32)
                  + b4_ref[...]).astype(o_ref.dtype)


def prepare_params(params):
    """One-time parameter preprocessing (hoisted out of the forward path).

    Casts matmul weights to bf16, keeps biases f32, and zero-pads the final
    (32,3)/(1,3) layer to 8 lanes so the kernel output stays compact.
    """
    out_dim = params["w4"].shape[1]                  # 3
    w4 = jnp.zeros((params["w4"].shape[0], _OUT_PAD), jnp.bfloat16
                   ).at[:, :out_dim].set(params["w4"].astype(jnp.bfloat16))
    b4 = jnp.zeros((1, _OUT_PAD), jnp.float32).at[:, :out_dim].set(
        params["b4"].astype(jnp.float32))
    return {
        "w1": params["w1"].astype(jnp.bfloat16),
        "b1": params["b1"].astype(jnp.float32),
        "w2": params["w2"].astype(jnp.bfloat16),
        "b2": params["b2"].astype(jnp.float32),
        "w3": params["w3"].astype(jnp.bfloat16),
        "b3": params["b3"].astype(jnp.float32),
        "w4": w4,
        "b4": b4,
        "out_dim": out_dim,
    }


def exoplanet_nn_forward(x, prepped):
    """x: (B, D_in) float32. prepped: output of `prepare_params`."""
    B, D_in = x.shape
    out_dim = prepped["out_dim"]

    # Pad batch only to the 16-row sublane multiple (bf16 packs 16 rows/vreg);
    # the partial last tile is handled by Pallas blocked edge handling, so no
    # up-to-tile_b tail-padding blowup.
    b_pad = _round_up(B, 16)
    if b_pad != B:
        x = jnp.pad(x, ((0, b_pad - B), (0, 0)))

    tile_b = min(_TILE_B_MAX, b_pad)
    # v7x megacore: guarantee >= 2 grid steps when the whole batch would fit in
    # one tile so dimension_semantics=("parallel",) can use both TensorCores.
    if 32 <= b_pad <= _TILE_B_MAX:
        tile_b = _round_up(pl.cdiv(b_pad, 2), 16)

    grid = (pl.cdiv(b_pad, tile_b),)
    const = lambda i: (0, 0)                         # weights/biases resident across grid

    w1, b1 = prepped["w1"], prepped["b1"]
    w2, b2 = prepped["w2"], prepped["b2"]
    w3, b3 = prepped["w3"], prepped["b3"]
    w4, b4 = prepped["w4"], prepped["b4"]

    flops = 2 * b_pad * (D_in * 128 + 128 * 64 + 64 * 32 + 32 * _OUT_PAD)
    bytes_accessed = (b_pad * D_in * 4                                     # x (f32)
                      + (w1.size + w2.size + w3.size + w4.size) * 2        # bf16 weights
                      + (b1.size + b2.size + b3.size + b4.size) * 4        # f32 biases
                      + b_pad * _OUT_PAD * 4)                              # output (f32)

    out = pl.pallas_call(
        _mlp_kernel,
        out_shape=jax.ShapeDtypeStruct((b_pad, _OUT_PAD), jnp.float32),
        grid_spec=pltpu.PrefetchScalarGridSpec(
            num_scalar_prefetch=0,
            grid=grid,
            in_specs=[
                pl.BlockSpec((tile_b, D_in), lambda i: (i, 0)),   # x tile (f32)
                pl.BlockSpec(w1.shape, const), pl.BlockSpec(b1.shape, const),
                pl.BlockSpec(w2.shape, const), pl.BlockSpec(b2.shape, const),
                pl.BlockSpec(w3.shape, const), pl.BlockSpec(b3.shape, const),
                pl.BlockSpec(w4.shape, const), pl.BlockSpec(b4.shape, const),
            ],
            out_specs=pl.BlockSpec((tile_b, _OUT_PAD), lambda i: (i, 0)),
        ),
        compiler_params=pltpu.CompilerParams(
            dimension_semantics=("parallel",),
            vmem_limit_bytes=_VMEM_LIMIT),
        cost_estimate=pl.CostEstimate(flops=flops,
                                      bytes_accessed=bytes_accessed,
                                      transcendentals=0),
    )(x, w1, b1, w2, b2, w3, b3, w4, b4)

    return out[:B, :out_dim]


def _reference_forward(x, params):
    """Pure-JAX f32 reference (eval-mode dropout = identity)."""
    h = jnp.maximum(x @ params["w1"] + params["b1"], 0.0)
    h = jnp.maximum(h @ params["w2"] + params["b2"], 0.0)
    h = jnp.maximum(h @ params["w3"] + params["b3"], 0.0)
    return h @ params["w4"] + params["b4"]


def init_params(key, input_size):
    """Deterministic synthetic parameter init matching nn.Linear shapes.

    PyTorch nn.Linear(in, out) holds weight (out, in); we store the transpose
    (in, out) so the kernel computes x @ W + b.
    """
    dims = [(input_size, 128), (128, 64), (64, 32), (32, 3)]
    params = {}
    for i, (d_in, d_out) in enumerate(dims, start=1):
        key, kw, kb = jax.random.split(key, 3)
        bound = 1.0 / (d_in ** 0.5)   # same scale as PyTorch default uniform init
        params[f"w{i}"] = jax.random.uniform(
            kw, (d_in, d_out), jnp.float32, minval=-bound, maxval=bound)
        params[f"b{i}"] = jax.random.uniform(
            kb, (1, d_out), jnp.float32, minval=-bound, maxval=bound)
    return params


if __name__ == "__main__":
    key = jax.random.PRNGKey(0)
    key, kx, kx2 = jax.random.split(key, 3)

    batch = 8
    input_size = 16          # small synthetic feature count
    x = jax.random.normal(kx, (batch, input_size), jnp.float32)

    params = init_params(key, input_size)
    prepped = prepare_params(params)     # one-time parameter prep (hoisted)

    out = exoplanet_nn_forward(x, prepped)
    out = jax.block_until_ready(out)

    assert out.shape == (batch, 3), out.shape
    assert out.dtype == jnp.float32, out.dtype

    ref = _reference_forward(x, params)
    assert jnp.all(jnp.isfinite(out))
    # bf16 matmul operands -> loose tolerance vs f32 reference
    assert jnp.allclose(out, ref, rtol=5e-2, atol=5e-2), \
        float(jnp.max(jnp.abs(out - ref)))

    # Second check: non-multiple batch exercising the multi-step grid, the
    # v7x two-step split and the Pallas partial edge block (masked OOB store).
    batch2 = 300
    x2 = jax.random.normal(kx2, (batch2, input_size), jnp.float32)
    out2 = jax.block_until_ready(exoplanet_nn_forward(x2, prepped))
    ref2 = _reference_forward(x2, params)
    assert out2.shape == (batch2, 3), out2.shape
    assert jnp.all(jnp.isfinite(out2))
    assert jnp.allclose(out2, ref2, rtol=5e-2, atol=5e-2), \
        float(jnp.max(jnp.abs(out2 - ref2)))

    print("KERNEL_OK")
</pallas_src>

<mosaic_0001>
module attributes {stable_mosaic.version = 11 : i64} {
  func.func @_mlp_kernel(%arg0: i32, %arg1: memref<16x16xf32, #tpu.memory_space<vmem>>, %arg2: memref<16x128xbf16, #tpu.memory_space<vmem>>, %arg3: memref<1x128xf32, #tpu.memory_space<vmem>>, %arg4: memref<128x64xbf16, #tpu.memory_space<vmem>>, %arg5: memref<1x64xf32, #tpu.memory_space<vmem>>, %arg6: memref<64x32xbf16, #tpu.memory_space<vmem>>, %arg7: memref<1x32xf32, #tpu.memory_space<vmem>>, %arg8: memref<32x8xbf16, #tpu.memory_space<vmem>>, %arg9: memref<1x8xf32, #tpu.memory_space<vmem>>, %arg10: memref<16x8xf32, #tpu.memory_space<vmem>>) attributes {dimension_semantics = [#tpu.dimension_semantics<parallel>], iteration_bounds = array<i64: 1>, scalar_prefetch = 0 : i64, scratch_operands = 0 : i64, tpu.core_type = #tpu.core_type<tc>, window_params = [{transform_indices = @transform_0, window_bounds = array<i64: 16, 16>}, {pipeline_mode = #tpu.pipeline_mode<synchronous>, transform_indices = @transform_1, window_bounds = array<i64: 16, 128>}, {pipeline_mode = #tpu.pipeline_mode<synchronous>, transform_indices = @transform_2, window_bounds = array<i64: 1, 128>}, {pipeline_mode = #tpu.pipeline_mode<synchronous>, transform_indices = @transform_3, window_bounds = array<i64: 128, 64>}, {pipeline_mode = #tpu.pipeline_mode<synchronous>, transform_indices = @transform_4, window_bounds = array<i64: 1, 64>}, {pipeline_mode = #tpu.pipeline_mode<synchronous>, transform_indices = @transform_5, window_bounds = array<i64: 64, 32>}, {pipeline_mode = #tpu.pipeline_mode<synchronous>, transform_indices = @transform_6, window_bounds = array<i64: 1, 32>}, {pipeline_mode = #tpu.pipeline_mode<synchronous>, transform_indices = @transform_7, window_bounds = array<i64: 32, 8>}, {pipeline_mode = #tpu.pipeline_mode<synchronous>, transform_indices = @transform_8, window_bounds = array<i64: 1, 8>}, {transform_indices = @transform_9, window_bounds = array<i64: 16, 8>}]} {
    %c0 = arith.constant 0 : index
    %c0_0 = arith.constant 0 : index
    %0 = vector.load %arg1[%c0, %c0_0] : memref<16x16xf32, #tpu.memory_space<vmem>>, vector<16x16xf32>
    %1 = arith.truncf %0 : vector<16x16xf32> to vector<16x16xbf16>
    %c0_1 = arith.constant 0 : index
    %c0_2 = arith.constant 0 : index
    %2 = vector.load %arg2[%c0_1, %c0_2] : memref<16x128xbf16, #tpu.memory_space<vmem>>, vector<16x128xbf16>
    %cst = arith.constant dense<0.000000e+00> : vector<16x128xf32>
    %3 = tpu.matmul %1, %2, %cst {dimension_numbers = #tpu.dot_dimension_numbers<[1], [0], [0], [1], [0, 0, 1, 1], [], []>} : vector<16x16xbf16>, vector<16x128xbf16>, vector<16x128xf32> -> vector<16x128xf32>
    %c0_3 = arith.constant 0 : index
    %c0_4 = arith.constant 0 : index
    %4 = vector.load %arg3[%c0_3, %c0_4] : memref<1x128xf32, #tpu.memory_space<vmem>>, vector<1x128xf32>
    %5 = vector.broadcast %4 : vector<1x128xf32> to vector<16x128xf32>
    %6 = arith.addf %3, %5 : vector<16x128xf32>
    %cst_5 = arith.constant 0.000000e+00 : f32
    %7 = vector.broadcast %cst_5 : f32 to vector<16x128xf32>
    %8 = arith.maximumf %6, %7 : vector<16x128xf32>
    %9 = arith.truncf %8 : vector<16x128xf32> to vector<16x128xbf16>
    %c0_6 = arith.constant 0 : index
    %c0_7 = arith.constant 0 : index
    %10 = vector.load %arg4[%c0_6, %c0_7] : memref<128x64xbf16, #tpu.memory_space<vmem>>, vector<128x64xbf16>
    %cst_8 = arith.constant dense<0.000000e+00> : vector<16x64xf32>
    %11 = tpu.matmul %9, %10, %cst_8 {dimension_numbers = #tpu.dot_dimension_numbers<[1], [0], [0], [1], [0, 0, 1, 1], [], []>} : vector<16x128xbf16>, vector<128x64xbf16>, vector<16x64xf32> -> vector<16x64xf32>
    %c0_9 = arith.constant 0 : index
    %c0_10 = arith.constant 0 : index
    %12 = vector.load %arg5[%c0_9, %c0_10] : memref<1x64xf32, #tpu.memory_space<vmem>>, vector<1x64xf32>
    %13 = vector.broadcast %12 : vector<1x64xf32> to vector<16x64xf32>
    %14 = arith.addf %11, %13 : vector<16x64xf32>
    %cst_11 = arith.constant 0.000000e+00 : f32
    %15 = vector.broadcast %cst_11 : f32 to vector<16x64xf32>
    %16 = arith.maximumf %14, %15 : vector<16x64xf32>
    %17 = arith.truncf %16 : vector<16x64xf32> to vector<16x64xbf16>
    %c0_12 = arith.constant 0 : index
    %c0_13 = arith.constant 0 : index
    %18 = vector.load %arg6[%c0_12, %c0_13] : memref<64x32xbf16, #tpu.memory_space<vmem>>, vector<64x32xbf16>
    %cst_14 = arith.constant dense<0.000000e+00> : vector<16x32xf32>
    %19 = tpu.matmul %17, %18, %cst_14 {dimension_numbers = #tpu.dot_dimension_numbers<[1], [0], [0], [1], [0, 0, 1, 1], [], []>} : vector<16x64xbf16>, vector<64x32xbf16>, vector<16x32xf32> -> vector<16x32xf32>
    %c0_15 = arith.constant 0 : index
    %c0_16 = arith.constant 0 : index
    %20 = vector.load %arg7[%c0_15, %c0_16] : memref<1x32xf32, #tpu.memory_space<vmem>>, vector<1x32xf32>
    %21 = vector.broadcast %20 : vector<1x32xf32> to vector<16x32xf32>
    %22 = arith.addf %19, %21 : vector<16x32xf32>
    %cst_17 = arith.constant 0.000000e+00 : f32
    %23 = vector.broadcast %cst_17 : f32 to vector<16x32xf32>
    %24 = arith.maximumf %22, %23 : vector<16x32xf32>
    %25 = arith.truncf %24 : vector<16x32xf32> to vector<16x32xbf16>
    %c0_18 = arith.constant 0 : index
    %c0_19 = arith.constant 0 : index
    %26 = vector.load %arg8[%c0_18, %c0_19] : memref<32x8xbf16, #tpu.memory_space<vmem>>, vector<32x8xbf16>
    %cst_20 = arith.constant dense<0.000000e+00> : vector<16x8xf32>
    %27 = tpu.matmul %25, %26, %cst_20 {dimension_numbers = #tpu.dot_dimension_numbers<[1], [0], [0], [1], [0, 0, 1, 1], [], []>} : vector<16x32xbf16>, vector<32x8xbf16>, vector<16x8xf32> -> vector<16x8xf32>
    %c0_21 = arith.constant 0 : index
    %c0_22 = arith.constant 0 : index
    %28 = vector.load %arg9[%c0_21, %c0_22] : memref<1x8xf32, #tpu.memory_space<vmem>>, vector<1x8xf32>
    %29 = vector.broadcast %28 : vector<1x8xf32> to vector<16x8xf32>
    %30 = arith.addf %27, %29 : vector<16x8xf32>
    %c0_23 = arith.constant 0 : index
    %c0_24 = arith.constant 0 : index
    %31 = vector.load %arg10[%c0_23, %c0_24] : memref<16x8xf32, #tpu.memory_space<vmem>>, vector<16x8xf32>
    tpu.vector_store %arg10[%c0_23, %c0_24], %30 {strides = array<i32>} : memref<16x8xf32, #tpu.memory_space<vmem>>, vector<16x8xf32>,
    return
  }
  func.func @transform_0(%arg0: i32) -> (i32, i32) {
    %c0_i32 = arith.constant 0 : i32
    %c0_i32_0 = arith.constant 0 : i32
    return %arg0, %c0_i32 : i32, i32
  }
  func.func @transform_1(%arg0: i32) -> (i32, i32) {
    %c0_i32 = arith.constant 0 : i32
    %c0_i32_0 = arith.constant 0 : i32
    %c0_i32_1 = arith.constant 0 : i32
    return %c0_i32, %c0_i32_0 : i32, i32
  }
  func.func @transform_2(%arg0: i32) -> (i32, i32) {
    %c0_i32 = arith.constant 0 : i32
    %c0_i32_0 = arith.constant 0 : i32
    %c0_i32_1 = arith.constant 0 : i32
    return %c0_i32, %c0_i32_0 : i32, i32
  }
  func.func @transform_3(%arg0: i32) -> (i32, i32) {
    %c0_i32 = arith.constant 0 : i32
    %c0_i32_0 = arith.constant 0 : i32
    %c0_i32_1 = arith.constant 0 : i32
    return %c0_i32, %c0_i32_0 : i32, i32
  }
  func.func @transform_4(%arg0: i32) -> (i32, i32) {
    %c0_i32 = arith.constant 0 : i32
    %c0_i32_0 = arith.constant 0 : i32
    %c0_i32_1 = arith.constant 0 : i32
    return %c0_i32, %c0_i32_0 : i32, i32
  }
  func.func @transform_5(%arg0: i32) -> (i32, i32) {
    %c0_i32 = arith.constant 0 : i32
    %c0_i32_0 = arith.constant 0 : i32
    %c0_i32_1 = arith.constant 0 : i32
    return %c0_i32, %c0_i32_0 : i32, i32
  }
  func.func @transform_6(%arg0: i32) -> (i32, i32) {
    %c0_i32 = arith.constant 0 : i32
    %c0_i32_0 = arith.constant 0 : i32
    %c0_i32_1 = arith.constant 0 : i32
    return %c0_i32, %c0_i32_0 : i32, i32
  }
  func.func @transform_7(%arg0: i32) -> (i32, i32) {
    %c0_i32 = arith.constant 0 : i32
    %c0_i32_0 = arith.constant 0 : i32
    %c0_i32_1 = arith.constant 0 : i32
    return %c0_i32, %c0_i32_0 : i32, i32
  }
  func.func @transform_8(%arg0: i32) -> (i32, i32) {
    %c0_i32 = arith.constant 0 : i32
    %c0_i32_0 = arith.constant 0 : i32
    %c0_i32_1 = arith.constant 0 : i32
    return %c0_i32, %c0_i32_0 : i32, i32
  }
  func.func @transform_9(%arg0: i32) -> (i32, i32) {
    %c0_i32 = arith.constant 0 : i32
    %c0_i32_0 = arith.constant 0 : i32
    return %arg0, %c0_i32 : i32, i32
  }
}

</mosaic_0001>

<bundles_post_ra>
// kernel: tpu_custom_call.1
= control target key start
LH: loop header
LB: loop body
LE: loop exit
PB: predicated region body
PF: predicated region fallthrough
CT: control target
= control target key end

     0   :  { %v480_v0 = vmov 0.0   ;;  %vm481_vm0 = vmmov 0   ;;  %vm51_vm1 = vcmask 130048   ;;  %vm253_vm2 = vcmask 523264   ;;  %s624_s1 = inlined_call_operand.vmem [shape: bf16[16,128], index: 1, kind: input, shape index: {}]   ;;  %s625_s0 = inlined_call_operand.vmem [shape: f32[16,16], index: 0, kind: input, shape index: {}]   ;;  %s626_s3 = inlined_call_operand.vmem [shape: bf16[128,64], index: 3, kind: input, shape index: {}]   ;;  %s627_s5 = inlined_call_operand.vmem [shape: bf16[64,32], index: 5, kind: input, shape index: {}]   ;;  %s628_s2 = inlined_call_operand.vmem [shape: f32[1,128], index: 2, kind: input, shape index: {}]   ;;  %s629_s4 = inlined_call_operand.vmem [shape: f32[1,64], index: 4, kind: input, shape index: {}]   ;;  %s630_s7 = inlined_call_operand.vmem [shape: bf16[32,8], index: 7, kind: input, shape index: {}]   ;;  %s631_s6 = inlined_call_operand.vmem [shape: f32[1,32], index: 6, kind: input, shape index: {}]   ;;  %s632_s8 = inlined_call_operand.vmem [shape: f32[1,8], index: 8, kind: input, shape index: {}]   ;;  %s633_s9 = inlined_call_operand.vmem [shape: f32[16,8], index: 9, kind: output, shape index: {}]  }
   0x1   :  { %417 = vmatprep.subr.bf16.mxu0 %v480_v0  ;;  %v465_v1 = vld [vmem:[%s624_s1] sm:$0xff]   ;;  %419 = vmatprep.mubr.msk.bf16.mxu0 %vm481_vm0, %v480_v0  ;;  %v34_v3 = vld [vmem:[%s625_s0 + $0x8] sm:$0xff]  ;;  %v468_v7 = vld [vmem:[%s626_s3 + $0x10] sm:$0xff]   ;;  %vm324_vm3 = vcmask 261120   ;;  %vm369_vm4 = vcmask 64512  }
   0x2   :  { %v33_v2 = vld [vmem:[%s625_s0] sm:$0xff]  ;;  %423 = vmatprep.subr.bf16.mxu1 %v480_v0  ;;  %439 = vmatprep.mubr.msk.bf16.mxu1 %vm481_vm0, %v480_v0  ;;  %v467_v6 = vld [vmem:[%s626_s3 + $0x8] sm:$0xff]   ;;  %v469_v8 = vld [vmem:[%s626_s3 + $0x18] sm:$0xff]  }
   0x3   :  { %418 = vmatpush3.bf16.msra.mxu0 %v465_v1  ;;  %v35_v4 = vpack.c.bf16 %v34_v3, %v33_v2  ;;  %v466_v5 = vld [vmem:[%s626_s3] sm:$0xff]   ;;  %v471_v10 = vld [vmem:[%s626_s3 + $0x28] sm:$0xff]   ;;  %v472_v11 = vld [vmem:[%s626_s3 + $0x30] sm:$0xff]  }
   0x4   :  { %443 = vmatprep.subr.bf16.mxu0 %v480_v0  ;;  %424 = vmatpush3.bf16.msra.mxu1 %v466_v5  ;;  %v470_v9 = vld [vmem:[%s626_s3 + $0x20] sm:$0xff]   ;;  %v473_v12 = vld [vmem:[%s626_s3 + $0x38] sm:$0xff]   ;;  %v475_v14 = vld [vmem:[%s627_s5 + $0x8] sm:$0xff]  }
   0x5   :  { %425 = vmatprep.subr.bf16.mxu1 %v480_v0  ;;  %v474_v13 = vld [vmem:[%s627_s5] sm:$0xff]   ;;  %v476_v25 = vld [vmem:[%s627_s5 + $0x10] sm:$0xff]   ;;  %v477_v26 = vld [vmem:[%s627_s5 + $0x18] sm:$0xff]  }
   0x6   :  { %420 = vmatmul.mubr.msk.bf16.vlgmr.msra.gmra.mrb[0].mxu0 %vm51_vm1, %v35_v4  ;;  %v376_v15 = vld [vmem:[%s628_s2] ss:$0 sm:$0xff]  ;;  %v479_v38 = vld [vmem:[%s630_s7 + $0x8] sm:$0xff]  }
   0x7   :  { %451 = vmatprep.mubr.msk.bf16.mxu0 %vm481_vm0, %v480_v0  ;;  %444 = vmatpush3.bf16.msra.mxu0 %v474_v13  ;;  %v379_v27 = vld [vmem:[%s629_s4] ss:$0 sm:$0xff] }
   0x8   :  { %426 = vmatpush3.bf16.msra.mxu1 %v467_v6  ;;  %445 = vmatprep.subr.bf16.mxu0 %v480_v0  ;;  %v478_v37 = vld [vmem:[%s630_s7] sm:$0xff]  }
   0x9   :  { %427 = vmatprep.subr.bf16.mxu1 %v480_v0  ;;  %v388_v39 = vld [vmem:[%s631_s6] ss:$0 sm:$0xff] }
   0xa   :  { %v394_v49 = vld [vmem:[%s632_s8] ss:$0 sm:$0xff] }
   0xb   :  { %446 = vmatpush3.bf16.msra.mxu0 %v475_v14 }
   0xc   :  { %428 = vmatpush3.bf16.msra.mxu1 %v468_v7  ;;  %447 = vmatprep.subr.bf16.mxu0 %v480_v0 }
   0xd   :  { %429 = vmatprep.subr.bf16.mxu1 %v480_v0 }
   0xf   :  { %448 = vmatpush3.bf16.msra.mxu0 %v476_v25 }
  0x10   :  { %430 = vmatpush3.bf16.msra.mxu1 %v469_v8  ;;  %449 = vmatprep.subr.bf16.mxu0 %v480_v0 }
  0x11   :  { %431 = vmatprep.subr.bf16.mxu1 %v480_v0 }
  0x13   :  { %450 = vmatpush3.bf16.msra.mxu0 %v477_v26 }
  0x14   :  { %432 = vmatpush3.bf16.msra.mxu1 %v470_v9  ;;  %455 = vmatprep.subr.bf16.mxu0 %v480_v0 }
  0x15   :  { %433 = vmatprep.subr.bf16.mxu1 %v480_v0 }
  0x18   :  { %434 = vmatpush3.bf16.msra.mxu1 %v471_v10 }
  0x19   :  { %435 = vmatprep.subr.bf16.mxu1 %v480_v0 }
  0x1c   :  { %436 = vmatpush3.bf16.msra.mxu1 %v472_v11 }
  0x1d   :  { %437 = vmatprep.subr.bf16.mxu1 %v480_v0 }
  0x20   :  { %438 = vmatpush3.bf16.msra.mxu1 %v473_v12 }
  0xd9   :  { %v89_v16 = vpop.f32.mrb[0].mxu0 }
  0xda   :  { %v90_v17 = vadd.f32 %v376_v15, %v89_v16  ;;  %v421_v18 = vpop.f32.mrb[1].mxu0 }
  0xdb   :  { %v92_v19 = vpop.f32.mrb[2].mxu0 }
  0xdc   :  { %v93_v20 = vadd.f32 %v376_v15, %v92_v19  ;;  %v422_v21 = vpop.f32.mrb[3].mxu0  ;;  %v96_v22 = vmax.f32 %v90_v17, 0.0 }
  0xde   :  { %v97_v23 = vmax.f32 %v93_v20, 0.0 }
  0xe0   :  { %v98_v24 = vpack.c.bf16 %v97_v23, %v96_v22 }
  0xe2   :  { %440 = vmatmul.mubr.bf16.vlgmr.msra.gmra.mrb[0].mxu1 %v98_v24 }
 0x1b5   :  { %v204_v28 = vpop.f32.mrb[0].mxu1 }
 0x1b6   :  { %v205_v29 = vadd.f32 %v379_v27, %v204_v28  ;;  %v441_v30 = vpop.f32.mrb[1].mxu1 }
 0x1b7   :  { %v207_v31 = vpop.f32.mrb[2].mxu1 }
 0x1b8   :  { %v208_v32 = vadd.f32 %v379_v27, %v207_v31  ;;  %v442_v33 = vpop.f32.mrb[3].mxu1  ;;  %v211_v34 = vmax.f32 %v205_v29, 0.0 }
 0x1ba   :  { %v212_v35 = vmax.f32 %v208_v32, 0.0 }
 0x1bc   :  { %v213_v36 = vpack.c.bf16 %v212_v35, %v211_v34 }
 0x1be   :  { %452 = vmatmul.mubr.msk.bf16.vlgmr.msra.gmra.mrb[4].mxu0 %vm253_vm2, %v213_v36 }
 0x1bf   :  { %459 = vmatprep.mubr.msk.bf16.mxu0 %vm481_vm0, %v480_v0  ;;  %456 = vmatpush3.bf16.msra.mxu0 %v478_v37 }
 0x1c0   :  { %457 = vmatprep.subr.bf16.mxu0 %v480_v0 }
 0x1c3   :  { %458 = vmatpush3.bf16.msra.mxu0 %v479_v38 }
 0x291   :  { %v291_v40 = vpop.f32.mrb[4].mxu0 }
 0x292   :  { %v292_v41 = vadd.f32 %v388_v39, %v291_v40  ;;  %v453_v42 = vpop.f32.mrb[5].mxu0 }
 0x293   :  { %v294_v43 = vpop.f32.mrb[6].mxu0 }
 0x294   :  { %v295_v44 = vadd.f32 %v388_v39, %v294_v43  ;;  %v454_v45 = vpop.f32.mrb[7].mxu0  ;;  %v298_v46 = vmax.f32 %v292_v41, 0.0 }
 0x296   :  { %v299_v47 = vmax.f32 %v295_v44, 0.0 }
 0x298   :  { %v300_v48 = vpack.c.bf16 %v299_v47, %v298_v46 }
 0x29a   :  { %460 = vmatmul.mubr.msk.bf16.vlgmr.msra.gmra.mrb[8].mxu0 %vm324_vm3, %v300_v48 }
 0x36d   :  { %v362_v50 = vpop.f32.mrb[8].mxu0 }
 0x36e   :  { %v363_v51 = vadd.f32 %v394_v49, %v362_v50  ;;  %v461_v52 = vpop.f32.mrb[9].mxu0 }
 0x36f   :  { %v365_v53 = vpop.f32.mrb[10].mxu0 }
 0x370   :  { %370 = vst.msk [vmem:[%s633_s9] sm:$0xff] %vm369_vm4, %v363_v51  ;;  %v366_v54 = vadd.f32 %v394_v49, %v365_v53  ;;  %v462_v55 = vpop.f32.mrb[11].mxu0 }
 0x372   :  { %371 = vst.msk [vmem:[%s633_s9 + $0x8] sm:$0xff] %vm369_vm4, %v366_v54 }

</bundles_post_ra>
